<compile_context>
chip_gen: v7x
topology: tpu7x:2x2x1
jax: 0.10.0
libtpu: 0.0.40
codegen_flags: <defaults>
</compile_context>

<pallas_src>
import jax
import jax.numpy as jnp
from jax.experimental import pallas as pl
from jax.experimental.pallas import tpu as pltpu

_TILE_IO_BUDGET_BYTES = 24 << 20   # budget for double-buffered x/y tiles
_VMEM_LIMIT_BYTES = 48 << 20       # < v7x 64 MiB physical, > all default scoped limits


def _round_up(a, b):
    return ((a + b - 1) // b) * b


def _cauchy_kernel(inv_scale_ref, sqx_ref, sqy_ref, x_ref, y_ref, o_ref, acc_ref):
    # inv_scale_ref: SMEM (1,)  f32  -- 1 / scale[l]
    # sqx_ref:       VMEM (tn, 1)    -- ||x_i||^2 (precomputed in wrapper)
    # sqy_ref:       VMEM (1, tm)    -- ||y_j||^2 (precomputed in wrapper)
    # x_ref:         VMEM (tn, tk)   -- x feature slab
    # y_ref:         VMEM (tm, tk)   -- y feature slab
    # o_ref:         VMEM (tn, tm)   -- output tile
    # acc_ref:       VMEM (tn, tm) f32 scratch accumulator (resident across k)
    k = pl.program_id(2)

    @pl.when(k == 0)
    def _init():
        acc_ref[...] = jnp.zeros_like(acc_ref)

    # x @ y^T for this feature slab: contract directly on the last axis of both
    # operands (MXU-native "B transposed" orientation, no in-kernel transpose),
    # accumulated in f32.
    acc_ref[...] += jax.lax.dot_general(
        x_ref[...], y_ref[...],
        dimension_numbers=(((1,), (1,)), ((), ())),
        preferred_element_type=jnp.float32)

    @pl.when(k == pl.num_programs(2) - 1)
    def _epilogue():
        d = sqx_ref[...] + sqy_ref[...] - 2.0 * acc_ref[...]     # VPU broadcast adds
        t = 1.0 + d * inv_scale_ref[0]                           # scalar mult, no divide
        # Exact reciprocal keeps 1e-5 agreement with the reference; flip
        # approx=True (EUP slot) if the accuracy budget allows.
        o_ref[...] = pl.reciprocal(t, approx=False).astype(o_ref.dtype)


def multi_cauchy_kernel(x, y, scale, l, *, fixed_scale=True,
                        tn=512, tm=1024, tk=None,
                        matmul_dtype=None, out_dtype=jnp.float32):
    """Pallas equivalent of MultiCauchyKernel.forward(x, y, l)."""
    N, D = x.shape
    M, Dy = y.shape
    assert D == Dy

    # Hoisted one-time O(N*D + M*D) squared-norm precompute (always f32).
    xf = x.astype(jnp.float32)
    yf = y.astype(jnp.float32)
    sq_x = jnp.sum(xf * xf, axis=-1, keepdims=True)          # (N, 1)
    sq_y = jnp.sum(yf * yf, axis=-1, keepdims=True).T        # (1, M)

    # scale[l] selection (plus softplus/clamp for the learned-scale variant)
    # and its reciprocal are cheap one-time glue; done in plain JAX.
    s = scale[l]
    if not fixed_scale:
        s = jnp.clip(jax.nn.softplus(s), 1e-10, 1e4)
    inv_scale = (1.0 / s).reshape(1).astype(jnp.float32)

    # Optional reduced-precision matmul inputs (sq_x/sq_y + epilogue stay f32).
    in_dtype = jnp.dtype(x.dtype if matmul_dtype is None else matmul_dtype)
    x_in = x.astype(in_dtype)
    y_in = y.astype(in_dtype)

    # --- Tile selection (generation-safe VMEM budget) -----------------------
    # Rows (sublanes) -> multiples of 8, output columns (lanes) -> multiples of
    # 128 for lane-dense, unmasked stores.  Tall row stripes also cut the
    # y re-fetch traffic (y is re-read N/tn times).
    tn = _round_up(min(tn, _round_up(N, 8)), 8)
    tm = _round_up(min(tm, _round_up(M, 128)), 128)
    # v7x has 2 TensorCores: if the clamped grid collapsed to 1x1, split the
    # rows so at least one parallel axis has 2 blocks.
    if pl.cdiv(N, tn) == 1 and pl.cdiv(M, tm) == 1 and N > 8:
        tn = _round_up(pl.cdiv(N, 2), 8)

    if tk is None:
        # Full-D slabs if the double-buffered x/y tile traffic fits the budget,
        # otherwise slab the feature (reduction) axis at 512.
        if 2 * (tn + tm) * D * in_dtype.itemsize <= _TILE_IO_BUDGET_BYTES:
            tk = D
        else:
            tk = 512

    Dp = D if tk == D else _round_up(D, tk)
    if Dp != D:
        # Cheap O((N+M)*Dp) zero-pad of the contracting dim only; zeros change
        # neither the dot products nor the (already computed) squared norms.
        x_in = jnp.pad(x_in, ((0, 0), (0, Dp - D)))
        y_in = jnp.pad(y_in, ((0, 0), (0, Dp - D)))

    grid = (pl.cdiv(N, tn), pl.cdiv(M, tm), pl.cdiv(Dp, tk))

    out = pl.pallas_call(
        _cauchy_kernel,
        out_shape=jax.ShapeDtypeStruct((N, M), out_dtype),
        grid=grid,
        in_specs=[
            pl.BlockSpec(memory_space=pltpu.MemorySpace.SMEM),      # inv_scale (1,)
            pl.BlockSpec((tn, 1), lambda i, j, k: (i, 0)),          # ||x_i||^2 row tile
            pl.BlockSpec((1, tm), lambda i, j, k: (0, j)),          # ||y_j||^2 col tile
            pl.BlockSpec((tn, tk), lambda i, j, k: (i, k)),         # x feature slab
            pl.BlockSpec((tm, tk), lambda i, j, k: (j, k)),         # y feature slab
        ],
        out_specs=pl.BlockSpec((tn, tm), lambda i, j, k: (i, j)),
        scratch_shapes=[pltpu.VMEM((tn, tm), jnp.float32)],
        compiler_params=pltpu.CompilerParams(
            dimension_semantics=("parallel", "parallel", "arbitrary"),
            vmem_limit_bytes=_VMEM_LIMIT_BYTES),
    )(inv_scale, sq_x, sq_y, x_in, y_in)

    return out


def _reference(x, y, scale, l):
    sq_x = jnp.sum(x ** 2, axis=-1, keepdims=True)
    sq_y = jnp.swapaxes(jnp.sum(y ** 2, axis=-1, keepdims=True), -2, -1)
    dot = x @ y.T
    d = sq_x + sq_y - 2.0 * dot
    return 1.0 / (1.0 + d / scale[l])


if __name__ == "__main__":
    # Deterministic parameters mirroring MultiCauchyKernel(scale=2.0, fixed_scale=True, dim=3)
    scale_value = 2.0
    dim = 3
    scale = jnp.full((dim,), scale_value, dtype=jnp.float32)   # np.repeat(scale, dim)
    l = 1

    k0, k1, k2, k3 = jax.random.split(jax.random.PRNGKey(0), 4)

    # Test 1: small, non-tile-aligned shapes -> exercises edge-block masking
    # (no pad/slice epilogue) and the 1x1-grid -> 2-row-block megacore split.
    N, M, D = 200, 272, 32
    x = jax.random.normal(k0, (N, D), dtype=jnp.float32)
    y = jax.random.normal(k1, (M, D), dtype=jnp.float32)
    out = jax.block_until_ready(multi_cauchy_kernel(x, y, scale, l))
    ref = _reference(x, y, scale, l)
    assert out.shape == (N, M)
    assert jnp.allclose(out, ref, atol=1e-5, rtol=1e-5)

    # Test 2: force the feature-slab (K-axis) accumulator path (tk < D).
    N2, M2, D2 = 64, 160, 256
    x2 = jax.random.normal(k2, (N2, D2), dtype=jnp.float32)
    y2 = jax.random.normal(k3, (M2, D2), dtype=jnp.float32)
    out2 = jax.block_until_ready(multi_cauchy_kernel(x2, y2, scale, l, tk=128))
    ref2 = _reference(x2, y2, scale, l)
    assert out2.shape == (N2, M2)
    assert jnp.allclose(out2, ref2, atol=1e-4, rtol=1e-4)

    print("KERNEL_OK")
</pallas_src>

<mosaic_0001>
module attributes {stable_mosaic.version = 11 : i64} {
  func.func @_cauchy_kernel(%arg0: i32, %arg1: i32, %arg2: i32, %arg3: memref<1xf32, #tpu.memory_space<smem>>, %arg4: memref<104x1xf32, #tpu.memory_space<vmem>>, %arg5: memref<1x384xf32, #tpu.memory_space<vmem>>, %arg6: memref<104x32xf32, #tpu.memory_space<vmem>>, %arg7: memref<384x32xf32, #tpu.memory_space<vmem>>, %arg8: memref<104x384xf32, #tpu.memory_space<vmem>>, %arg9: memref<104x384xf32, #tpu.memory_space<vmem>>) attributes {dimension_semantics = [#tpu.dimension_semantics<parallel>, #tpu.dimension_semantics<parallel>, #tpu.dimension_semantics<arbitrary>], iteration_bounds = array<i64: 2, 1, 1>, scalar_prefetch = 0 : i64, scratch_operands = 1 : i64, tpu.core_type = #tpu.core_type<tc>, window_params = [{transform_indices = @transform_0, window_bounds = array<i64: 1>}, {transform_indices = @transform_1, window_bounds = array<i64: 104, 1>}, {transform_indices = @transform_2, window_bounds = array<i64: 1, 384>}, {transform_indices = @transform_3, window_bounds = array<i64: 104, 32>}, {transform_indices = @transform_4, window_bounds = array<i64: 384, 32>}, {transform_indices = @transform_5, window_bounds = array<i64: 104, 384>}]} {
    %c0_i32 = arith.constant 0 : i32
    %0 = arith.cmpi eq, %arg2, %c0_i32 : i32
    %1 = arith.extui %0 : i1 to i32
    %c0_i32_0 = arith.constant 0 : i32
    %2 = arith.cmpi ne, %1, %c0_i32_0 : i32
    scf.if %2 {
      %cst_10 = arith.constant 0.000000e+00 : f32
      %12 = vector.broadcast %cst_10 : f32 to vector<104x384xf32>
      %c0_11 = arith.constant 0 : index
      %c0_12 = arith.constant 0 : index
      %13 = vector.load %arg9[%c0_11, %c0_12] : memref<104x384xf32, #tpu.memory_space<vmem>>, vector<104x384xf32>
      tpu.vector_store %arg9[%c0_11, %c0_12], %12 {strides = array<i32>} : memref<104x384xf32, #tpu.memory_space<vmem>>, vector<104x384xf32>,
    } else {
    }
    %c0 = arith.constant 0 : index
    %c0_1 = arith.constant 0 : index
    %3 = vector.load %arg9[%c0, %c0_1] : memref<104x384xf32, #tpu.memory_space<vmem>>, vector<104x384xf32>
    %c0_2 = arith.constant 0 : index
    %c0_3 = arith.constant 0 : index
    %4 = vector.load %arg6[%c0_2, %c0_3] : memref<104x32xf32, #tpu.memory_space<vmem>>, vector<104x32xf32>
    %c0_4 = arith.constant 0 : index
    %c0_5 = arith.constant 0 : index
    %5 = vector.load %arg7[%c0_4, %c0_5] : memref<384x32xf32, #tpu.memory_space<vmem>>, vector<384x32xf32>
    %cst = arith.constant dense<0.000000e+00> : vector<104x384xf32>
    %6 = tpu.matmul %4, %5, %cst {dimension_numbers = #tpu.dot_dimension_numbers<[1], [1], [0], [0], [0, 0, 1, 0], [], []>} : vector<104x32xf32>, vector<384x32xf32>, vector<104x384xf32> -> vector<104x384xf32>
    %7 = arith.addf %3, %6 : vector<104x384xf32>
    %c0_6 = arith.constant 0 : index
    %c0_7 = arith.constant 0 : index
    %8 = vector.load %arg9[%c0_6, %c0_7] : memref<104x384xf32, #tpu.memory_space<vmem>>, vector<104x384xf32>
    tpu.vector_store %arg9[%c0_6, %c0_7], %7 {strides = array<i32>} : memref<104x384xf32, #tpu.memory_space<vmem>>, vector<104x384xf32>,
    %c0_i32_8 = arith.constant 0 : i32
    %9 = arith.cmpi eq, %arg2, %c0_i32_8 : i32
    %10 = arith.extui %9 : i1 to i32
    %c0_i32_9 = arith.constant 0 : i32
    %11 = arith.cmpi ne, %10, %c0_i32_9 : i32
    scf.if %11 {
      %c0_10 = arith.constant 0 : index
      %c0_11 = arith.constant 0 : index
      %12 = vector.load %arg4[%c0_10, %c0_11] : memref<104x1xf32, #tpu.memory_space<vmem>>, vector<104x1xf32>
      %c0_12 = arith.constant 0 : index
      %c0_13 = arith.constant 0 : index
      %13 = vector.load %arg5[%c0_12, %c0_13] : memref<1x384xf32, #tpu.memory_space<vmem>>, vector<1x384xf32>
      %14 = vector.broadcast %12 : vector<104x1xf32> to vector<104x384xf32>
      %15 = vector.broadcast %13 : vector<1x384xf32> to vector<104x384xf32>
      %16 = arith.addf %14, %15 : vector<104x384xf32>
      %c0_14 = arith.constant 0 : index
      %c0_15 = arith.constant 0 : index
      %17 = vector.load %arg9[%c0_14, %c0_15] : memref<104x384xf32, #tpu.memory_space<vmem>>, vector<104x384xf32>
      %cst_16 = arith.constant 2.000000e+00 : f32
      %18 = vector.broadcast %cst_16 : f32 to vector<104x384xf32>
      %19 = arith.mulf %18, %17 : vector<104x384xf32>
      %20 = arith.subf %16, %19 : vector<104x384xf32>
      %c0_17 = arith.constant 0 : index
      %21 = memref.load %arg3[%c0_17] : memref<1xf32, #tpu.memory_space<smem>>
      %22 = vector.broadcast %21 : f32 to vector<104x384xf32>
      %23 = arith.mulf %20, %22 : vector<104x384xf32>
      %cst_18 = arith.constant 1.000000e+00 : f32
      %24 = vector.broadcast %cst_18 : f32 to vector<104x384xf32>
      %25 = arith.addf %24, %23 : vector<104x384xf32>
      %26 = tpu.reciprocal %25 : vector<104x384xf32> -> vector<104x384xf32>
      %c0_19 = arith.constant 0 : index
      %c0_20 = arith.constant 0 : index
      %27 = vector.load %arg8[%c0_19, %c0_20] : memref<104x384xf32, #tpu.memory_space<vmem>>, vector<104x384xf32>
      tpu.vector_store %arg8[%c0_19, %c0_20], %26 {strides = array<i32>} : memref<104x384xf32, #tpu.memory_space<vmem>>, vector<104x384xf32>,
    } else {
    }
    return
  }
  func.func @transform_0(%arg0: i32, %arg1: i32, %arg2: i32) -> i32 {
    %c0_i32 = arith.constant 0 : i32
    %c0_i32_0 = arith.constant 0 : i32
    return %c0_i32 : i32
  }
  func.func @transform_1(%arg0: i32, %arg1: i32, %arg2: i32) -> (i32, i32) {
    %c0_i32 = arith.constant 0 : i32
    %c0_i32_0 = arith.constant 0 : i32
    return %arg0, %c0_i32 : i32, i32
  }
  func.func @transform_2(%arg0: i32, %arg1: i32, %arg2: i32) -> (i32, i32) {
    %c0_i32 = arith.constant 0 : i32
    %c0_i32_0 = arith.constant 0 : i32
    return %c0_i32, %arg1 : i32, i32
  }
  func.func @transform_3(%arg0: i32, %arg1: i32, %arg2: i32) -> (i32, i32) {
    %c0_i32 = arith.constant 0 : i32
    return %arg0, %arg2 : i32, i32
  }
  func.func @transform_4(%arg0: i32, %arg1: i32, %arg2: i32) -> (i32, i32) {
    %c0_i32 = arith.constant 0 : i32
    return %arg1, %arg2 : i32, i32
  }
  func.func @transform_5(%arg0: i32, %arg1: i32, %arg2: i32) -> (i32, i32) {
    %c0_i32 = arith.constant 0 : i32
    return %arg0, %arg1 : i32, i32
  }
}

</mosaic_0001>

<bundles_post_ra>
// kernel: tpu_custom_call.1
= control target key start
LH: loop header
LB: loop body
LE: loop exit
PB: predicated region body
PF: predicated region fallthrough
CT: control target
= control target key end

     0   :  { %s3211_s0 = inlined_call_operand.<no memory space> [shape: f32[1], index: 0, kind: input, shape index: {}]   ;;  %s3212_s1 = inlined_call_operand.vmem [shape: f32[200,1], index: 1, kind: input, shape index: {}]   ;;  %s3213_s2 = inlined_call_operand.vmem [shape: f32[1,272], index: 2, kind: input, shape index: {}]   ;;  %s3214_s3 = inlined_call_operand.vmem [shape: f32[200,32], index: 3, kind: input, shape index: {}]   ;;  %s3215_s4 = inlined_call_operand.vmem [shape: f32[272,32], index: 4, kind: input, shape index: {}]   ;;  %s3216_s5 = inlined_call_operand.vmem [shape: f32[200,272], index: 5, kind: output, shape index: {}]  }
   0x1   :  { %10 = sst [smem:[#allocation3]] %s3211_s0 }
   0x2   :  { %s2442_s20 = smov 0   ;;  %s2444_s21 = smov 0  }
   0x3   :  { %s2446_s22 = smov 0   ;;  %s2448_s23 = smov 0  }
   0x4   :  { %s2450_s24 = smov 0  }
   0x5 LB: > { %s1773_s0 = sadd.s32 4294967295, %s2371_s24   ;;  %s35_s25 = sadd.s32 1, %s2367_s23  ;;  %s2371_s24 = sphi %s2450_s24, %s16_s24   ;;  %s2367_s23 = sphi %s2448_s23, %s3228_s23   ;;  %s2363_s22 = sphi %s2446_s22, %s3227_s22   ;;  %s2359_s21 = sphi %s2444_s21, %s3226_s21   ;;  %s2355_s20 = sphi %s2442_s20, %s3225_s20  }
   0x6   : > { %p37_p0 = scmp.ge.s32.totalorder %s35_s25, 2  ;;  %s173_s26 = sadd.s32 1, %s2359_s21 }
   0x7   : > { %p183_p1 = scmp.ne.s32.totalorder %s2359_s21, %s2355_s20  ;;  %p184_p2 = scmp.eq.s32.totalorder %s1773_s0, 1 }
   0x8   : > { %s3230_s25 = smov (%p37_p0, %s35_s25), 0  ;;  %p1779_p4 = scmp.ge.s32.totalorder %s2371_s24, 1 }
   0x9   : > { %p2474_p3 = por %p184_p2, %p183_p1  ;;  %s168_s28 = ssub.s32 %s2367_s23, %s3230_s25 }
   0xa   : > { %p272_p5 = scmp.lt.s32.totalorder %s2371_s24, 3  ;;  %p171_p6 = scmp.eq.s32.totalorder %s168_s28, 0 }
   0xc   : > { %p273_p7 = pnand %p1779_p4, %p272_p5 }
   0xd   : > { %s2483_s29 = scalar_select %p171_p6, %s2359_s21, %s173_s26  }
   0xe   : > { %276 = sbr.rel (%p273_p7) target bundleno = 437 (0x1b5), region = 40  ;;  %v496_v0 = vld [vmem:[%s3215_s4 + $0x80] sm:$0xff] (!%p273_p7)  ;;  %v497_v1 = vld [vmem:[%s3215_s4 + $0x88] sm:$0xff] (!%p273_p7)  ;;  %vm528_vm0 = vcmask (!%p273_p7), 261120   ;;  %v2405_v3 = vmov (!%p273_p7), 0.0|0.0   ;;  %v498_v10 = vld [vmem:[%s3215_s4 + $0x90] sm:$0xff] (!%p273_p7) }
   0xf   : > { %v512_v2 = vld [vmem:[%s3215_s4 + $0x100] sm:$0xff] (!%p273_p7)  ;;  %2073 = vmatprep.subr.bf16.mxu1 (!%p273_p7), %v2405_v3  ;;  %v2025_v4 = vpack.c.bf16 (!%p273_p7), %v497_v1, %v496_v0  ;;  %vm2497_vm1 = vmpackc.low (!%p273_p7), %vm528_vm0, %vm528_vm0  ;;  %v513_v6 = vld [vmem:[%s3215_s4 + $0x108] sm:$0xff] (!%p273_p7)  ;;  %s2508_s15 = smul.u32 (!%p273_p7), 13, %s2363_s22  ;;  %vm2406_vm2 = vmmov (!%p273_p7), 0   ;;  %v2407_v12 = vmov (!%p273_p7), 0.0   ;;  %v2408_v13 = vmov (!%p273_p7), 0  }
  0x10   : > { %v480_v7 = vld [vmem:[%s3215_s4] sm:$0xff] (!%p273_p7)  ;;  %v2074_v8 = vpack.c.bf16 (!%p273_p7), %v513_v6, %v512_v2  ;;  %v481_v9 = vld [vmem:[%s3215_s4 + $0x8] sm:$0xff] (!%p273_p7)  ;;  %v499_v11 = vld [vmem:[%s3215_s4 + $0x98] sm:$0xff] (!%p273_p7)  ;;  %1986 = vmatprep.mubr.msk.f32.mxu1 (!%p273_p7), %vm2406_vm2, %v2407_v12  ;;  %2217 = vset.pattern.permute.xlu0 (!%p273_p7), %v2408_v13  ;;  %s1317_s13 = sld [smem:[#allocation3]] (!%p273_p7)  ;;  %s326_s14 = sand.u32 (!%p273_p7), 1, %s2355_s20  }
  0x11   : > { %2027 = vmatprep.subr.msk.bf16.mxu0 (!%p273_p7), %vm2497_vm1, %v2025_v4  ;;  %v2028_v14 = vpack.c.bf16 (!%p273_p7), %v481_v9, %v480_v7  ;;  %v2031_v15 = vpack.c.bf16 (!%p273_p7), %v499_v11, %v498_v10  ;;  %p334_p8 = scmp.lt.s32.totalorder (!%p273_p7), %s2508_s15, 24  ;;  %2218 = vset.pattern.permute.xlu1 (!%p273_p7), %v2408_v13  ;;  %v514_v16 = vld [vmem:[%s3215_s4 + $0x110] sm:$0xff] (!%p273_p7)  ;;  %v515_v17 = vld [vmem:[%s3215_s4 + $0x118] sm:$0xff] (!%p273_p7)  ;;  %v500_v20 = vld [vmem:[%s3215_s4 + $0xa0] sm:$0xff] (!%p273_p7)  ;;  %s2910_s20 = smul.u32 (!%p273_p7), 312, %s326_s14 }
  0x12   : > { %2076 = vmatpush3.bf16.xpose.msk.msra.mxu1 (!%p273_p7), %vm2497_vm1, %v2074_v8  ;;  %v482_v18 = vld [vmem:[%s3215_s4 + $0x10] sm:$0xff] (!%p273_p7)  ;;  %v483_v19 = vld [vmem:[%s3215_s4 + $0x18] sm:$0xff] (!%p273_p7)  ;;  %v501_v21 = vld [vmem:[%s3215_s4 + $0xa8] sm:$0xff] (!%p273_p7)  ;;  %v2078_v22 = vpack.c.bf16 (!%p273_p7), %v515_v17, %v514_v16 }
  0x13   : > { %2030 = vmatpush3.bf16.xpose.msk.msra.mxu0 (!%p273_p7), %vm2497_vm1, %v2028_v14  ;;  %2077 = vmatprep.subr.bf16.mxu1 (!%p273_p7), %v2405_v3  ;;  %v2034_v23 = vpack.c.bf16 (!%p273_p7), %v483_v19, %v482_v18  ;;  %v2037_v24 = vpack.c.bf16 (!%p273_p7), %v501_v21, %v500_v20  ;;  %v516_v25 = vld [vmem:[%s3215_s4 + $0x120] sm:$0xff] (!%p273_p7)  ;;  %v517_v26 = vld [vmem:[%s3215_s4 + $0x128] sm:$0xff] (!%p273_p7)  ;;  %v502_v29 = vld [vmem:[%s3215_s4 + $0xb0] sm:$0xff] (!%p273_p7)  ;;  %s2930_s16 = scalar_lea.vmem (!%p273_p7), [#allocation4], %s2910_s20  }
  0x14   : > { %2033 = vmatprep.subr.msk.bf16.mxu0 (!%p273_p7), %vm2497_vm1, %v2031_v15  ;;  %v484_v27 = vld [vmem:[%s3215_s4 + $0x20] sm:$0xff] (!%p273_p7)  ;;  %v485_v28 = vld [vmem:[%s3215_s4 + $0x28] sm:$0xff] (!%p273_p7)  ;;  %v503_v30 = vld [vmem:[%s3215_s4 + $0xb8] sm:$0xff] (!%p273_p7)  ;;  %v2082_v31 = vpack.c.bf16 (!%p273_p7), %v517_v26, %v516_v25 }
  0x15   : > { %s335_s12 = scalar_select %p334_p8, %s2508_s15, 24  ;;  %v2040_v33 = vpack.c.bf16 %v485_v28, %v484_v27  ;;  %v2043_v34 = vpack.c.bf16 %v503_v30, %v502_v29  ;;  %v518_v36 = vld [vmem:[%s3215_s4 + $0x130] sm:$0xff]  ;;  %v519_v37 = vld [vmem:[%s3215_s4 + $0x138] sm:$0xff]  ;;  %v504_v41 = vld [vmem:[%s3215_s4 + $0xc0] sm:$0xff] }
  0x16   : > { %v486_v39 = vld [vmem:[%s3215_s4 + $0x30] sm:$0xff]  ;;  %v487_v40 = vld [vmem:[%s3215_s4 + $0x38] sm:$0xff]  ;;  %v505_v42 = vld [vmem:[%s3215_s4 + $0xc8] sm:$0xff]  ;;  %v2086_v44 = vpack.c.bf16 %v519_v37, %v518_v36  ;;  %s1484_s17 = ssub.s32 (%p2474_p3), 25, %s2508_s15  ;;  %s2107_s19 = smul.u32 (%p2474_p3), 312, %s2363_s22 }
  0x17   : > { %s1780_s18 = sshll.u32 %s335_s12, 3  ;;  %v2046_v46 = vpack.c.bf16 %v487_v40, %v486_v39  ;;  %v2049_v47 = vpack.c.bf16 %v505_v42, %v504_v41  ;;  %v520_v50 = vld [vmem:[%s3215_s4 + $0x140] sm:$0xff]  ;;  %v521_v51 = vld [vmem:[%s3215_s4 + $0x148] sm:$0xff]  ;;  %v506_v54 = vld [vmem:[%s3215_s4 + $0xd0] sm:$0xff]  ;;  %v1146_v42 = vlaneseq  ;;  %p1485_p9 = scmp.lt.s32.totalorder (%p2474_p3), %s1484_s17, 13 }
  0x18   : > { %s2564_s7 = scalar_lea.vmem %s3214_s3, %s1780_s18  ;;  %s2588_s0 = scalar_lea.vmem %s3212_s1, %s1780_s18  ;;  %v488_v52 = vld [vmem:[%s3215_s4 + $0x40] sm:$0xff]  ;;  %v489_v53 = vld [vmem:[%s3215_s4 + $0x48] sm:$0xff]  ;;  %v507_v55 = vld [vmem:[%s3215_s4 + $0xd8] sm:$0xff]  ;;  %v2090_v57 = vpack.c.bf16 %v521_v51, %v520_v50 }
  0x19   : > { %v2581_v32 = vld [vmem:[%s2564_s7] sm:$0xff]  ;;  %v1068_v38 = vld [vmem:[%s2588_s0 + $0x10] sm:$0xff]  ;;  %v1067_v43 = vld [vmem:[%s2588_s0 + $0x8] sm:$0xff]  ;;  %v2052_v59 = vpack.c.bf16 %v489_v53, %v488_v52  ;;  %v2055_v60 = vpack.c.bf16 %v507_v55, %v506_v54  ;;  %s3049_s18 = scalar_lea.vmem (%p2474_p3), %s3216_s5, %s2107_s19  }
  0x1a   : > { %2080 = vmatpush3.bf16.xpose.msk.msra.mxu1 %vm2497_vm1, %v2078_v22  ;;  %1899 = vmatprep.mubr.msk.f32.mxu0 %vm528_vm0, %v2581_v32  ;;  %v1066_v35 = vld [vmem:[%s2588_s0] sm:$0xff]  ;;  %v1069_v45 = vld [vmem:[%s2588_s0 + $0x18] sm:$0xff]  ;;  %v1071_v49 = vld [vmem:[%s2588_s0 + $0x28] sm:$0xff] }
  0x1b   : > { %2036 = vmatpush3.bf16.xpose.msk.msra.mxu0 %vm2497_vm1, %v2034_v23  ;;  %2081 = vmatprep.subr.bf16.mxu1 %v2405_v3  ;;  %v1070_v48 = vld [vmem:[%s2588_s0 + $0x20] sm:$0xff]  ;;  %v1072_v56 = vld [vmem:[%s2588_s0 + $0x30] sm:$0xff]  ;;  %v1073_v58 = vld [vmem:[%s2588_s0 + $0x38] sm:$0xff] }
  0x1c   : > { %2039 = vmatprep.subr.msk.bf16.mxu0 %vm2497_vm1, %v2037_v24  ;;  %1082 = vperm.xlu0 %2217, %v1066_v35   ;;  %v1074_v61 = vld [vmem:[%s2588_s0 + $0x40] sm:$0xff]  ;;  %v1075_v62 = vld [vmem:[%s2588_s0 + $0x48] sm:$0xff]  ;;  %v522_v63 = vld [vmem:[%s3215_s4 + $0x150] sm:$0xff] }
  0x1d   : > { %1092 = vperm.xlu1 %2218, %v1068_v38   ;;  %v523_v0 = vld [vmem:[%s3215_s4 + $0x158] sm:$0xff]  ;;  %v490_v1 = vld [vmem:[%s3215_s4 + $0x50] sm:$0xff]  ;;  %v508_v4 = vld [vmem:[%s3215_s4 + $0xe0] sm:$0xff] }
  0x1e   : > { %v491_v2 = vld [vmem:[%s3215_s4 + $0x58] sm:$0xff]  ;;  %v509_v6 = vld [vmem:[%s3215_s4 + $0xe8] sm:$0xff]  ;;  %v1076_v7 = vld [vmem:[%s2588_s0 + $0x50] sm:$0xff]  ;;  %v2094_v8 = vpack.c.bf16 %v523_v0, %v522_v63 }
  0x1f   : > { %v1077_v9 = vld [vmem:[%s2588_s0 + $0x58] sm:$0xff]  ;;  %v2058_v10 = vpack.c.bf16 %v491_v2, %v490_v1  ;;  %v2061_v11 = vpack.c.bf16 %v509_v6, %v508_v4  ;;  %v1078_v13 = vld [vmem:[%s2588_s0 + $0x60] sm:$0xff]  ;;  %v525_v15 = vld [vmem:[%s3215_s4 + $0x168] sm:$0xff] }
  0x20   : > { %1087 = vperm.xlu0 %2217, %v1067_v43   ;;  %v524_v14 = vld [vmem:[%s3215_s4 + $0x160] sm:$0xff]  ;;  %v493_v17 = vld [vmem:[%s3215_s4 + $0x68] sm:$0xff]  ;;  %v510_v18 = vld [vmem:[%s3215_s4 + $0xf0] sm:$0xff]  ;;  %v1147_v43 = vshrl.u32 %v1146_v42, 7 }
  0x21   : > { %1097 = vperm.xlu1 %2218, %v1069_v45   ;;  %v492_v16 = vld [vmem:[%s3215_s4 + $0x60] sm:$0xff]  ;;  %v511_v19 = vld [vmem:[%s3215_s4 + $0xf8] sm:$0xff]  ;;  %v2098_v20 = vpack.c.bf16 %v525_v15, %v524_v14  ;;  %v526_v23 = vld [vmem:[%s3215_s4 + $0x170] sm:$0xff] }
  0x22   : > { %2084 = vmatpush3.bf16.xpose.msk.msra.mxu1 %vm2497_vm1, %v2082_v31  ;;  %v2064_v21 = vpack.c.bf16 %v493_v17, %v492_v16  ;;  %v2067_v22 = vpack.c.bf16 %v511_v19, %v510_v18  ;;  %v527_v24 = vld [vmem:[%s3215_s4 + $0x178] sm:$0xff]  ;;  %v494_v25 = vld [vmem:[%s3215_s4 + $0x70] sm:$0xff]  ;;  %v468_v28 = vld [vmem:[%s2564_s7 + $0x8] sm:$0xff] }
  0x23   : > { %2042 = vmatpush3.bf16.xpose.msk.msra.mxu0 %vm2497_vm1, %v2040_v33  ;;  %2085 = vmatprep.subr.bf16.mxu1 %v2405_v3  ;;  %v2102_v26 = vpack.c.bf16 %v527_v24, %v526_v23  ;;  %v469_v29 = vld [vmem:[%s2564_s7 + $0x10] sm:$0xff]  ;;  %v470_v5 = vld [vmem:[%s2564_s7 + $0x18] sm:$0xff]  ;;  %v471_v30 = vld [vmem:[%s2564_s7 + $0x20] sm:$0xff] }
  0x24   : > { %2045 = vmatprep.subr.msk.bf16.mxu0 %vm2497_vm1, %v2043_v34  ;;  %1102 = vperm.xlu0 %2217, %v1070_v48   ;;  %v472_v31 = vld [vmem:[%s2564_s7 + $0x28] sm:$0xff]  ;;  %v474_v33 = vld [vmem:[%s2564_s7 + $0x38] sm:$0xff]  ;;  %v475_v34 = vld [vmem:[%s2564_s7 + $0x40] sm:$0xff] }
  0x25   : > { %1107 = vperm.xlu1 %2218, %v1071_v49   ;;  %v476_v35 = vld [vmem:[%s2564_s7 + $0x48] sm:$0xff]  ;;  %v477_v36 = vld [vmem:[%s2564_s7 + $0x50] sm:$0xff]  ;;  %v478_v37 = vld [vmem:[%s2564_s7 + $0x58] sm:$0xff] }
  0x26   : > { %v479_v38 = vld [vmem:[%s2564_s7 + $0x60] sm:$0xff] }
  0x27   : > { %v1079_v48 = vld [vmem:[%s3213_s2] sm:$0x7] }
  0x28   : > { %1112 = vperm.xlu0 %2217, %v1072_v56   ;;  %v2813_v56 = vstv %s1317_s13 }
  0x29   : > { %1117 = vperm.xlu1 %2218, %v1073_v58  }
  0x2a   : > { %2088 = vmatpush3.bf16.xpose.msk.msra.mxu1 %vm2497_vm1, %v2086_v44 }
  0x2b   : > { %2048 = vmatpush3.bf16.xpose.msk.msra.mxu0 %vm2497_vm1, %v2046_v46  ;;  %2089 = vmatprep.subr.bf16.mxu1 %v2405_v3  ;;  %v1148_v46 = vsub.s32 0, %v1147_v43 }
  0x2c   : > { %2051 = vmatprep.subr.msk.bf16.mxu0 %vm2497_vm1, %v2049_v47  ;;  %1122 = vperm.xlu0 %2217, %v1074_v61   ;;  %v1152_v47 = vsub.s32 1, %v1147_v43 }
  0x2d   : > { %1127 = vperm.xlu1 %2218, %v1075_v62   ;;  %v2805_v50 = vrot.slane %v1079_v48, %v1148_v46 }
  0x2e   : > { %v2807_v51 = vrot.slane %v1079_v48, %v1152_v47 }
  0x30   : > { %1132 = vperm.xlu0 %2217, %v1076_v7  }
  0x31   : > { %1137 = vperm.xlu1 %2218, %v1077_v9  }
  0x32   : > { %2092 = vmatpush3.bf16.xpose.msk.msra.mxu1 %vm2497_vm1, %v2090_v57 }
  0x33   : > { %2054 = vmatpush3.bf16.xpose.msk.msra.mxu0 %vm2497_vm1, %v2052_v59  ;;  %2093 = vmatprep.subr.bf16.mxu1 %v2405_v3 }
  0x34   : > { %2057 = vmatprep.subr.msk.bf16.mxu0 %vm2497_vm1, %v2055_v60  ;;  %1142 = vperm.xlu0 %2217, %v1078_v13  }
  0x3a   : > { %2096 = vmatpush3.bf16.xpose.msk.msra.mxu1 %vm2497_vm1, %v2094_v8 }
  0x3b   : > { %2060 = vmatpush3.bf16.xpose.msk.msra.mxu0 %vm2497_vm1, %v2058_v10  ;;  %2097 = vmatprep.subr.bf16.mxu1 %v2405_v3 }
  0x3c   : > { %2063 = vmatprep.subr.msk.bf16.mxu0 %vm2497_vm1, %v2061_v11 }
  0x42   : > { %2100 = vmatpush3.bf16.xpose.msk.msra.mxu1 %vm2497_vm1, %v2098_v20 }
  0x43   : > { %2066 = vmatpush3.bf16.xpose.msk.msra.mxu0 %vm2497_vm1, %v2064_v21  ;;  %2101 = vmatprep.subr.bf16.mxu1 %v2405_v3  ;;  %v495_v3 = vld [vmem:[%s3215_s4 + $0x78] sm:$0xff] }
  0x44   : > { %2069 = vmatprep.subr.msk.bf16.mxu0 %vm2497_vm1, %v2067_v22  ;;  %v2070_v27 = vpack.c.bf16 %v495_v3, %v494_v25 }
  0x4a   : > { %2104 = vmatpush3.bf16.xpose.msk.msra.mxu1 %vm2497_vm1, %v2102_v26 }
  0x4b   : > { %2072 = vmatpush3.bf16.xpose.msk.msra.mxu0 %vm2497_vm1, %v2070_v27 }
  0x51   : > { %1987 = vmatmul.mubr.msk.f32.vlgmr.msra.gmra.mrb[0].mxu1 %vm528_vm0, %v2581_v32 }
  0x52   : > { %1900 = vmatmul.mubr.msk.f32.vlgmr.msra.gmra.mrb[0].mxu0 %vm528_vm0, %v2581_v32  ;;  %1989 = vmatprep.mubr.msk.f32.mxu1 %vm2406_vm2, %v2407_v12  ;;  %v473_v32 = vld [vmem:[%s2564_s7 + $0x30] sm:$0xff] }
  0x53   : > { %1901 = vmatprep.mubr.msk.f32.mxu0 %vm528_vm0, %v468_v28 }
  0x55   : > { %1990 = vmatmul.mubr.msk.f32.gmra.mrb[2].mxu1 %vm528_vm0, %v468_v28 }
  0x56   : > { %1902 = vmatmul.mubr.msk.f32.gmra.mrb[2].mxu0 %vm528_vm0, %v468_v28  ;;  %1992 = vmatprep.mubr.msk.f32.mxu1 %vm2406_vm2, %v2407_v12 }
  0x57   : > { %1903 = vmatprep.mubr.msk.f32.mxu0 %vm528_vm0, %v469_v29 }
  0x59   : > { %1993 = vmatmul.mubr.msk.f32.gmra.mrb[4].mxu1 %vm528_vm0, %v469_v29 }
  0x5a   : > { %1904 = vmatmul.mubr.msk.f32.gmra.mrb[4].mxu0 %vm528_vm0, %v469_v29  ;;  %1995 = vmatprep.mubr.msk.f32.mxu1 %vm2406_vm2, %v2407_v12 }
  0x5b   : > { %1905 = vmatprep.mubr.msk.f32.mxu0 %vm528_vm0, %v470_v5 }
  0x5d   : > { %1996 = vmatmul.mubr.msk.f32.gmra.mrb[6].mxu1 %vm528_vm0, %v470_v5 }
  0x5e   : > { %1906 = vmatmul.mubr.msk.f32.gmra.mrb[6].mxu0 %vm528_vm0, %v470_v5  ;;  %1998 = vmatprep.mubr.msk.f32.mxu1 %vm2406_vm2, %v2407_v12 }
  0x5f   : > { %1907 = vmatprep.mubr.msk.f32.mxu0 %vm528_vm0, %v471_v30 }
  0x61   : > { %1999 = vmatmul.mubr.msk.f32.gmra.mrb[8].mxu1 %vm528_vm0, %v471_v30 }
  0x62   : > { %1908 = vmatmul.mubr.msk.f32.gmra.mrb[8].mxu0 %vm528_vm0, %v471_v30  ;;  %2001 = vmatprep.mubr.msk.f32.mxu1 %vm2406_vm2, %v2407_v12 }
  0x63   : > { %1909 = vmatprep.mubr.msk.f32.mxu0 %vm528_vm0, %v472_v31 }
  0x65   : > { %2002 = vmatmul.mubr.msk.f32.gmra.mrb[10].mxu1 %vm528_vm0, %v472_v31 }
  0x66   : > { %1910 = vmatmul.mubr.msk.f32.gmra.mrb[10].mxu0 %vm528_vm0, %v472_v31  ;;  %2004 = vmatprep.mubr.msk.f32.mxu1 %vm2406_vm2, %v2407_v12 }
  0x67   : > { %1911 = vmatprep.mubr.msk.f32.mxu0 %vm528_vm0, %v473_v32 }
  0x69   : > { %2005 = vmatmul.mubr.msk.f32.gmra.mrb[12].mxu1 %vm528_vm0, %v473_v32 }
  0x6a   : > { %1912 = vmatmul.mubr.msk.f32.gmra.mrb[12].mxu0 %vm528_vm0, %v473_v32  ;;  %2007 = vmatprep.mubr.msk.f32.mxu1 %vm2406_vm2, %v2407_v12 }
  0x6b   : > { %1913 = vmatprep.mubr.msk.f32.mxu0 %vm528_vm0, %v474_v33 }
  0x6d   : > { %2008 = vmatmul.mubr.msk.f32.gmra.mrb[14].mxu1 %vm528_vm0, %v474_v33 }
  0x6e   : > { %1914 = vmatmul.mubr.msk.f32.gmra.mrb[14].mxu0 %vm528_vm0, %v474_v33  ;;  %2010 = vmatprep.mubr.msk.f32.mxu1 %vm2406_vm2, %v2407_v12 }
  0x6f   : > { %1915 = vmatprep.mubr.msk.f32.mxu0 %vm528_vm0, %v475_v34 }
  0x71   : > { %2011 = vmatmul.mubr.msk.f32.gmra.mrb[16].mxu1 %vm528_vm0, %v475_v34 }
  0x72   : > { %1916 = vmatmul.mubr.msk.f32.gmra.mrb[16].mxu0 %vm528_vm0, %v475_v34  ;;  %2013 = vmatprep.mubr.msk.f32.mxu1 %vm2406_vm2, %v2407_v12 }
  0x73   : > { %1917 = vmatprep.mubr.msk.f32.mxu0 %vm528_vm0, %v476_v35 }
  0x75   : > { %2014 = vmatmul.mubr.msk.f32.gmra.mrb[18].mxu1 %vm528_vm0, %v476_v35 }
  0x76   : > { %1918 = vmatmul.mubr.msk.f32.gmra.mrb[18].mxu0 %vm528_vm0, %v476_v35  ;;  %2016 = vmatprep.mubr.msk.f32.mxu1 %vm2406_vm2, %v2407_v12 }
  0x77   : > { %1919 = vmatprep.mubr.msk.f32.mxu0 %vm528_vm0, %v477_v36 }
  0x79   : > { %2017 = vmatmul.mubr.msk.f32.gmra.mrb[20].mxu1 %vm528_vm0, %v477_v36 }
  0x7a   : > { %1920 = vmatmul.mubr.msk.f32.gmra.mrb[20].mxu0 %vm528_vm0, %v477_v36  ;;  %2019 = vmatprep.mubr.msk.f32.mxu1 %vm2406_vm2, %v2407_v12 }
  0x7b   : > { %1921 = vmatprep.mubr.msk.f32.mxu0 %vm528_vm0, %v478_v37 }
  0x7d   : > { %2020 = vmatmul.mubr.msk.f32.gmra.mrb[22].mxu1 %vm528_vm0, %v478_v37 }
  0x7e   : > { %1922 = vmatmul.mubr.msk.f32.gmra.mrb[22].mxu0 %vm528_vm0, %v478_v37  ;;  %2022 = vmatprep.mubr.msk.f32.mxu1 %vm2406_vm2, %v2407_v12  ;;  %v1156_v12 = vsub.s32 2, %v1147_v43 }
  0x7f   : > { %1923 = vmatprep.mubr.msk.f32.mxu0 %vm528_vm0, %v479_v38 }
  0x80   : > { %v2809_v52 = vrot.slane %v1079_v48, %v1156_v12 }
  0x81   : > { %2023 = vmatmul.mubr.msk.f32.gmra.mrb[24].mxu1 %vm528_vm0, %v479_v38 }
  0x82   : > { %1924 = vmatmul.mubr.msk.f32.gmra.mrb[24].mxu0 %vm528_vm0, %v479_v38 }
  0x9b   : > { %v1083_v39 = vpop.permute.xlu0 %1082 }
  0x9c   : > { %v1093_v45 = vpop.permute.xlu1 %1092  ;;  %v1161_v54 = vadd.f32 %v2805_v50, %v1083_v39  ;;  %v1162_v55 = vadd.f32 %v2807_v51, %v1083_v39  ;;  %v1163_v57 = vadd.f32 %v2809_v52, %v1083_v39 }
  0x9d   : > { %v2824_v62 = vadd.f32 %v2805_v50, %v1093_v45  ;;  %v2827_v63 = vadd.f32 %v2807_v51, %v1093_v45  ;;  %v2830_v0 = vadd.f32 %v2809_v52, %v1093_v45 }
  0x9f   : > { %v1088_v40 = vpop.permute.xlu0 %1087 }
  0xa0   : > { %v1098_v53 = vpop.permute.xlu1 %1097  ;;  %v2817_v58 = vadd.f32 %v2805_v50, %v1088_v40  ;;  %v2820_v59 = vadd.f32 %v2807_v51, %v1088_v40  ;;  %v1166_v61 = vadd.f32 %v2809_v52, %v1088_v40 }
  0xa1   : > { %v2836_v4 = vadd.f32 %v2805_v50, %v1098_v53  ;;  %v2839_v6 = vadd.f32 %v2807_v51, %v1098_v53  ;;  %v2842_v7 = vadd.f32 %v2809_v52, %v1098_v53 }
  0xa3   : > { %v1103_v41 = vpop.permute.xlu0 %1102 }
  0xa4   : > { %v2833_v2 = vadd.f32 %v2805_v50, %v1103_v41  ;;  %v1108_v8 = vpop.permute.xlu1 %1107  ;;  %v2845_v13 = vadd.f32 %v2807_v51, %v1103_v41  ;;  %v2848_v14 = vadd.f32 %v2809_v52, %v1103_v41 }
  0xa5   : > { %v2851_v15 = vadd.f32 %v2805_v50, %v1108_v8  ;;  %v2857_v19 = vadd.f32 %v2807_v51, %v1108_v8  ;;  %v2860_v20 = vadd.f32 %v2809_v52, %v1108_v8 }
  0xa7   : > { %v1113_v44 = vpop.permute.xlu0 %1112 }
  0xa8   : > { %v2854_v18 = vadd.f32 %v2805_v50, %v1113_v44  ;;  %v2863_v23 = vadd.f32 %v2807_v51, %v1113_v44  ;;  %v2866_v24 = vadd.f32 %v2809_v52, %v1113_v44 }
  0xab   : > { %v1123_v49 = vpop.permute.xlu0 %1122 }
  0xac   : > { %v2869_v26 = vadd.f32 %v2805_v50, %v1123_v49  ;;  %v2872_v27 = vadd.f32 %v2807_v51, %v1123_v49  ;;  %v2875_v28 = vadd.f32 %v2809_v52, %v1123_v49 }
  0xaf   : > { %v1133_v60 = vpop.permute.xlu0 %1132 }
  0xb0   : > { %v2881_v34 = vadd.f32 %v2805_v50, %v1133_v60  ;;  %v2885_v38 = vadd.f32 %v2807_v51, %v1133_v60  ;;  %v2888_v39 = vadd.f32 %v2809_v52, %v1133_v60 }
  0xb3   : > { %v2877_v29 = vpop.permute.xlu0 %1142 }
  0xb4   : > { %v2894_v47 = vadd.f32 %v2805_v50, %v2877_v29  ;;  %v2898_v48 = vadd.f32 %v2807_v51, %v2877_v29 }
 0x124   : > { %v921_v1 = vpop.f32.mrb[0].mxu1 }
 0x125   : > { %v778_v9 = vpop.f32.mrb[0].mxu0  ;;  %v1241_v10 = vmul.f32 2.0, %v921_v1  ;;  %v1988_v11 = vpop.f32.mrb[1].mxu1 }
 0x126   : > { %v1239_v16 = vmul.f32 2.0, %v778_v9  ;;  %v780_v17 = vpop.f32.mrb[1].mxu0 }
 0x127   : > { %v1280_v21 = vsub.f32 %v1163_v57, %v1241_v10  ;;  %v1240_v22 = vmul.f32 2.0, %v780_v17  ;;  %v1118_v10 = vpop.permute.xlu1 %1117 }
 0x128   : > { %v1278_v25 = vsub.f32 %v1161_v54, %v1239_v16  ;;  %v926_v3 = vpop.f32.mrb[2].mxu1 }
 0x129   : > { %v1321_v5 = vmul.f32 %v2813_v56, %v1280_v21  ;;  %v1279_v30 = vsub.f32 %v1162_v55, %v1240_v22  ;;  %v784_v31 = vpop.f32.mrb[2].mxu0  ;;  %v1244_v32 = vmul.f32 2.0, %v926_v3  ;;  %v1991_v33 = vpop.f32.mrb[3].mxu1  ;;  %v2908_v21 = vadd.f32 %v2805_v50, %v1118_v10 }
 0x12a   : > { %v1319_v35 = vmul.f32 %v2813_v56, %v1278_v25  ;;  %v1242_v36 = vmul.f32 2.0, %v784_v31  ;;  %v786_v37 = vpop.f32.mrb[3].mxu0 }
 0x12b   : > { %v1360_v40 = vadd.f32 1.0, %v1321_v5  ;;  %v1320_v41 = vmul.f32 %v2813_v56, %v1279_v30  ;;  %v1283_v42 = vsub.f32 %v1166_v61, %v1244_v32  ;;  %v1243_v43 = vmul.f32 2.0, %v786_v37 }
 0x12c   : > { %v1358_v44 = vadd.f32 1.0, %v1319_v35  ;;  %v1281_v45 = vsub.f32 %v2817_v58, %v1242_v36  ;;  %v931_v46 = vpop.f32.mrb[4].mxu1 }
 0x12d   : > { %2219 = vrcp.f32 %v1360_v40  ;;  %v1359_v12 = vadd.f32 1.0, %v1320_v41  ;;  %v1324_v49 = vmul.f32 %v2813_v56, %v1283_v42  ;;  %v1282_v53 = vsub.f32 %v2820_v59, %v1243_v43  ;;  %v790_v54 = vpop.f32.mrb[4].mxu0  ;;  %v1994_v55 = vpop.f32.mrb[5].mxu1 }
 0x12e   : > { %2221 = vrcp.f32 %v1358_v44  ;;  %v1322_v57 = vmul.f32 %v2813_v56, %v1281_v45  ;;  %v1245_v58 = vmul.f32 2.0, %v790_v54  ;;  %v1247_v60 = vmul.f32 2.0, %v931_v46  ;;  %v792_v61 = vpop.f32.mrb[5].mxu0 }
 0x12f   : > { %2223 = vrcp.f32 %v1359_v12  ;;  %v1363_v1 = vadd.f32 1.0, %v1324_v49  ;;  %v1323_v8 = vmul.f32 %v2813_v56, %v1282_v53  ;;  %v1246_v9 = vmul.f32 2.0, %v792_v61 }
 0x130   : > { %v1361_v11 = vadd.f32 1.0, %v1322_v57  ;;  %v1284_v16 = vsub.f32 %v2824_v62, %v1245_v58  ;;  %v1286_v59 = vsub.f32 %v2830_v0, %v1247_v60  ;;  %v936_v17 = vpop.f32.mrb[6].mxu1  ;;  %v2919_v42 = vadd.f32 %v2807_v51, %v1118_v10 }
 0x131   : > { %2225 = vrcp.f32 %v1363_v1  ;;  %v1362_v22 = vadd.f32 1.0, %v1323_v8  ;;  %v1285_v25 = vsub.f32 %v2827_v63, %v1246_v9  ;;  %v796_v3 = vpop.f32.mrb[6].mxu0  ;;  %v1250_v5 = vmul.f32 2.0, %v936_v17  ;;  %v1997_v30 = vpop.f32.mrb[7].mxu1 }
 0x132   : > { %2227 = vrcp.f32 %v1361_v11  ;;  %v1325_v31 = vmul.f32 %v2813_v56, %v1284_v16  ;;  %v1327_v62 = vmul.f32 %v2813_v56, %v1286_v59  ;;  %v1248_v32 = vmul.f32 2.0, %v796_v3  ;;  %v798_v0 = vpop.f32.mrb[7].mxu0 }
 0x133   : > { %2229 = vrcp.f32 %v1362_v22  ;;  %v1326_v33 = vmul.f32 %v2813_v56, %v1285_v25  ;;  %v1289_v35 = vsub.f32 %v2842_v7, %v1250_v5  ;;  %v1249_v36 = vmul.f32 2.0, %v798_v0 }
 0x134   : > { %v1364_v37 = vadd.f32 1.0, %v1325_v31  ;;  %v1366_v40 = vadd.f32 1.0, %v1327_v62  ;;  %v1287_v63 = vsub.f32 %v2836_v4, %v1248_v32  ;;  %v941_v41 = vpop.f32.mrb[8].mxu1  ;;  %v2925_v4 = vadd.f32 %v2809_v52, %v1118_v10  ;;  %v1128_v32 = vpop.permute.xlu1 %1127 }
 0x135   : > { %v1365_v43 = vadd.f32 1.0, %v1326_v33  ;;  %v1330_v44 = vmul.f32 %v2813_v56, %v1289_v35  ;;  %v1288_v45 = vsub.f32 %v2839_v6, %v1249_v36  ;;  %v802_v46 = vpop.f32.mrb[8].mxu0  ;;  %v1253_v12 = vmul.f32 2.0, %v941_v41  ;;  %v2000_v49 = vpop.f32.mrb[9].mxu1 }
 0x136   : > { %2231 = vrcp.f32 %v1364_v37  ;;  %v1328_v7 = vmul.f32 %v2813_v56, %v1287_v63  ;;  %v1251_v53 = vmul.f32 2.0, %v802_v46  ;;  %v804_v54 = vpop.f32.mrb[9].mxu0 }
 0x137   : > { %v2220_v55 = vpop.eup %2219  ;;  %2233 = vrcp.f32 %v1366_v40  ;;  %v1369_v57 = vadd.f32 1.0, %v1330_v44  ;;  %v1329_v58 = vmul.f32 %v2813_v56, %v1288_v45  ;;  %v1292_v60 = vsub.f32 %v2848_v14, %v1253_v12 }
 0x138   : > { %v2222_v61 = vpop.eup %2221  ;;  %1438 = vst [vmem:[%s2930_s16 + $0x10] sm:$0xff] %v2220_v55  ;;  %2235 = vrcp.f32 %v1365_v43  ;;  %v1367_v6 = vadd.f32 1.0, %v1328_v7  ;;  %v1290_v1 = vsub.f32 %v2833_v2, %v1251_v53  ;;  %v1252_v8 = vmul.f32 2.0, %v804_v54  ;;  %v946_v9 = vpop.f32.mrb[10].mxu1 }
 0x139   : > { %v2224_v10 = vpop.eup %2223  ;;  %1436 = vst [vmem:[%s2930_s16] sm:$0xff] %v2222_v61  ;;  %2237 = vrcp.f32 %v1369_v57  ;;  %v1368_v11 = vadd.f32 1.0, %v1329_v58  ;;  %v1333_v16 = vmul.f32 %v2813_v56, %v1292_v60  ;;  %v808_v14 = vpop.f32.mrb[10].mxu0  ;;  %v1256_v59 = vmul.f32 2.0, %v946_v9 }
 0x13a   : > { %v2003_v17 = vpop.f32.mrb[11].mxu1  ;;  %1437 = vst [vmem:[%s2930_s16 + $0x8] sm:$0xff] %v2224_v10  ;;  %2239 = vrcp.f32 %v1367_v6  ;;  %v1331_v22 = vmul.f32 %v2813_v56, %v1290_v1  ;;  %v1291_v25 = vsub.f32 %v2845_v13, %v1252_v8  ;;  %v1254_v3 = vmul.f32 2.0, %v808_v14  ;;  %v810_v2 = vpop.f32.mrb[11].mxu0 }
 0x13b   : > { %v2226_v5 = vpop.eup %2225  ;;  %2241 = vrcp.f32 %v1368_v11  ;;  %v1372_v30 = vadd.f32 1.0, %v1333_v16  ;;  %v1295_v31 = vsub.f32 %v2860_v20, %v1256_v59  ;;  %v1255_v62 = vmul.f32 2.0, %v810_v2 }
 0x13c   : > { %v2228_v0 = vpop.eup %2227  ;;  %1441 = vst [vmem:[%s2930_s16 + $0x28] sm:$0xff] %v2226_v5  ;;  %v1370_v33 = vadd.f32 1.0, %v1331_v22  ;;  %v1332_v35 = vmul.f32 %v2813_v56, %v1291_v25  ;;  %v1293_v36 = vsub.f32 %v2851_v15, %v1254_v3  ;;  %v951_v37 = vpop.f32.mrb[12].mxu1  ;;  %v2944_v13 = vadd.f32 %v2805_v50, %v1128_v32 }
 0x13d   : > { %v2230_v40 = vpop.eup %2229  ;;  %1439 = vst [vmem:[%s2930_s16 + $0x18] sm:$0xff] %v2228_v0  ;;  %2243 = vrcp.f32 %v1372_v30  ;;  %v1336_v63 = vmul.f32 %v2813_v56, %v1295_v31  ;;  %v1294_v20 = vsub.f32 %v2857_v19, %v1255_v62  ;;  %v814_v41 = vpop.f32.mrb[12].mxu0  ;;  %v1259_v43 = vmul.f32 2.0, %v951_v37 }
 0x13e   : > { %v2006_v44 = vpop.f32.mrb[13].mxu1  ;;  %1440 = vst [vmem:[%s2930_s16 + $0x20] sm:$0xff] %v2230_v40  ;;  %2245 = vrcp.f32 %v1370_v33  ;;  %v1371_v45 = vadd.f32 1.0, %v1332_v35  ;;  %v1334_v15 = vmul.f32 %v2813_v56, %v1293_v36  ;;  %v1257_v46 = vmul.f32 2.0, %v814_v41  ;;  %v816_v12 = vpop.f32.mrb[13].mxu0 }
 0x13f   : > { %v1375_v49 = vadd.f32 1.0, %v1336_v63  ;;  %v1335_v7 = vmul.f32 %v2813_v56, %v1294_v20  ;;  %v1298_v53 = vsub.f32 %v2866_v24, %v1259_v43  ;;  %v1258_v54 = vmul.f32 2.0, %v816_v12  ;;  %v2968_v31 = vpop.permute.xlu1 %1137 }
 0x140   : > { %v2232_v55 = vpop.eup %2231  ;;  %2247 = vrcp.f32 %v1371_v45  ;;  %v1373_v19 = vadd.f32 1.0, %v1334_v15  ;;  %v1296_v57 = vsub.f32 %v2854_v18, %v1257_v46  ;;  %v2955_v58 = vadd.f32 %v2807_v51, %v1128_v32  ;;  %v956_v60 = vpop.f32.mrb[14].mxu1 }
 0x141   : > { %v2234_v61 = vpop.eup %2233  ;;  %1442 = vst [vmem:[%s2930_s16 + $0x30] sm:$0xff] %v2232_v55  ;;  %2249 = vrcp.f32 %v1375_v49  ;;  %v1374_v6 = vadd.f32 1.0, %v1335_v7  ;;  %v1339_v1 = vmul.f32 %v2813_v56, %v1298_v53  ;;  %v1297_v24 = vsub.f32 %v2863_v23, %v1258_v54  ;;  %v820_v8 = vpop.f32.mrb[14].mxu0 }
 0x142   : > { %v2009_v9 = vpop.f32.mrb[15].mxu1  ;;  %v2236_v10 = vpop.eup %2235  ;;  %1444 = vst [vmem:[%s2930_s16 + $0x40] sm:$0xff] %v2234_v61  ;;  %2251 = vrcp.f32 %v1373_v19  ;;  %v1337_v18 = vmul.f32 %v2813_v56, %v1296_v57  ;;  %v1260_v11 = vmul.f32 2.0, %v820_v8  ;;  %v1262_v16 = vmul.f32 2.0, %v956_v60 }
 0x143   : > { %v822_v14 = vpop.f32.mrb[15].mxu0  ;;  %v2238_v59 = vpop.eup %2237  ;;  %1443 = vst [vmem:[%s2930_s16 + $0x38] sm:$0xff] %v2236_v10  ;;  %2253 = vrcp.f32 %v1374_v6  ;;  %v1378_v17 = vadd.f32 1.0, %v1339_v1  ;;  %v1338_v22 = vmul.f32 %v2813_v56, %v1297_v24  ;;  %v1190_v2 = vadd.f32 %v2809_v52, %v1128_v32 }
 0x144   : > { %v1261_v25 = vmul.f32 2.0, %v822_v14  ;;  %v2240_v23 = vpop.eup %2239  ;;  %1447 = vst [vmem:[%s2930_s16 + $0x58] sm:$0xff] %v2238_v59  ;;  %v1376_v3 = vadd.f32 1.0, %v1337_v18  ;;  %v1299_v5 = vsub.f32 %v2908_v21, %v1260_v11  ;;  %v1301_v30 = vsub.f32 %v2925_v4, %v1262_v16  ;;  %v961_v62 = vpop.f32.mrb[16].mxu1 }
 0x145   : > { %v2242_v0 = vpop.eup %2241  ;;  %1445 = vst [vmem:[%s2930_s16 + $0x48] sm:$0xff] %v2240_v23  ;;  %2255 = vrcp.f32 %v1378_v17  ;;  %v1377_v33 = vadd.f32 1.0, %v1338_v22  ;;  %v1265_v36 = vmul.f32 2.0, %v961_v62  ;;  %v826_v37 = vpop.f32.mrb[16].mxu0  ;;  %v2980_v46 = vadd.f32 %v2805_v50, %v2968_v31 }
 0x146   : > { %v1300_v35 = vsub.f32 %v2919_v42, %v1261_v25  ;;  %v2012_v40 = vpop.f32.mrb[17].mxu1  ;;  %1446 = vst [vmem:[%s2930_s16 + $0x50] sm:$0xff] %v2242_v0  ;;  %2257 = vrcp.f32 %v1376_v3  ;;  %v1340_v32 = vmul.f32 %v2813_v56, %v1299_v5  ;;  %v1342_v21 = vmul.f32 %v2813_v56, %v1301_v30  ;;  %v828_v63 = vpop.f32.mrb[17].mxu0 }
 0x147   : > { %v1263_v4 = vmul.f32 2.0, %v826_v37  ;;  %v2244_v20 = vpop.eup %2243  ;;  %2259 = vrcp.f32 %v1377_v33  ;;  %v1304_v43 = vsub.f32 %v2875_v28, %v1265_v36  ;;  %v1264_v42 = vmul.f32 2.0, %v828_v63 }
 0x148   : > { %v1341_v41 = vmul.f32 %v2813_v56, %v1300_v35  ;;  %v2246_v44 = vpop.eup %2245  ;;  %1450 = vst [vmem:[%s2930_s16 + $0x70] sm:$0xff] %v2244_v20  ;;  %v1379_v45 = vadd.f32 1.0, %v1340_v32  ;;  %v1381_v15 = vadd.f32 1.0, %v1342_v21  ;;  %v966_v49 = vpop.f32.mrb[18].mxu1  ;;  %v2988_v50 = vadd.f32 %v2807_v51, %v2968_v31 }
 0x149   : > { %v1302_v12 = vsub.f32 %v2869_v26, %v1263_v4  ;;  %1448 = vst [vmem:[%s2930_s16 + $0x60] sm:$0xff] %v2246_v44  ;;  %v1345_v53 = vmul.f32 %v2813_v56, %v1304_v43  ;;  %v1303_v54 = vsub.f32 %v2872_v27, %v1264_v42  ;;  %v1268_v28 = vmul.f32 2.0, %v966_v49  ;;  %v832_v55 = vpop.f32.mrb[18].mxu0  ;;  %v2015_v19 = vpop.f32.mrb[19].mxu1 }
 0x14a   : > { %v1380_v7 = vadd.f32 1.0, %v1341_v41  ;;  %v2248_v57 = vpop.eup %2247  ;;  %2261 = vrcp.f32 %v1379_v45  ;;  %v1266_v60 = vmul.f32 2.0, %v832_v55  ;;  %v834_v61 = vpop.f32.mrb[19].mxu0  ;;  %v1196_v33 = vadd.f32 %v2809_v52, %v2968_v31 }
 0x14b   : > { %v1343_v26 = vmul.f32 %v2813_v56, %v1302_v12  ;;  %v2250_v6 = vpop.eup %2249  ;;  %1449 = vst [vmem:[%s2930_s16 + $0x68] sm:$0xff] %v2248_v57  ;;  %2263 = vrcp.f32 %v1381_v15  ;;  %v1384_v1 = vadd.f32 1.0, %v1345_v53  ;;  %v1344_v27 = vmul.f32 %v2813_v56, %v1303_v54 }
 0x14c   : > { %v1307_v24 = vsub.f32 %v1190_v2, %v1268_v28  ;;  %v2252_v8 = vpop.eup %2251  ;;  %1453 = vst [vmem:[%s2930_s16 + $0x88] sm:$0xff] %v2250_v6  ;;  %2265 = vrcp.f32 %v1380_v7  ;;  %v1305_v51 = vsub.f32 %v2944_v13, %v1266_v60  ;;  %v1267_v10 = vmul.f32 2.0, %v834_v61  ;;  %v971_v18 = vpop.f32.mrb[20].mxu1 }
 0x14d   : > { %v1382_v9 = vadd.f32 1.0, %v1343_v26  ;;  %v2254_v11 = vpop.eup %2253  ;;  %1451 = vst [vmem:[%s2930_s16 + $0x78] sm:$0xff] %v2252_v8  ;;  %2267 = vrcp.f32 %v1384_v1  ;;  %v1383_v16 = vadd.f32 1.0, %v1344_v27  ;;  %v1271_v59 = vmul.f32 2.0, %v971_v18  ;;  %v838_v17 = vpop.f32.mrb[20].mxu0 }
 0x14e   : > { %v1348_v14 = vmul.f32 %v2813_v56, %v1307_v24  ;;  %v2018_v22 = vpop.f32.mrb[21].mxu1  ;;  %1452 = vst [vmem:[%s2930_s16 + $0x80] sm:$0xff] %v2254_v11  ;;  %v1346_v25 = vmul.f32 %v2813_v56, %v1305_v51  ;;  %v1306_v23 = vsub.f32 %v2955_v58, %v1267_v10  ;;  %v1269_v13 = vmul.f32 2.0, %v838_v17  ;;  %v840_v3 = vpop.f32.mrb[21].mxu0 }
 0x14f   : > { %2269 = vrcp.f32 %v1382_v9  ;;  %v2256_v2 = vpop.eup %2255  ;;  %v1310_v30 = vsub.f32 %v2888_v39, %v1271_v59  ;;  %v1270_v62 = vmul.f32 2.0, %v840_v3 }
 0x150   : > { %2271 = vrcp.f32 %v1383_v16  ;;  %v1387_v5 = vadd.f32 1.0, %v1348_v14  ;;  %v2258_v0 = vpop.eup %2257  ;;  %1456 = vst [vmem:[%s2930_s16 + $0xa0] sm:$0xff] %v2256_v2  ;;  %v1385_v35 = vadd.f32 1.0, %v1346_v25  ;;  %v1347_v36 = vmul.f32 %v2813_v56, %v1306_v23  ;;  %v976_v37 = vpop.f32.mrb[22].mxu1 }
 0x151   : > { %v1308_v58 = vsub.f32 %v2881_v34, %v1269_v13  ;;  %v2260_v40 = vpop.eup %2259  ;;  %1454 = vst [vmem:[%s2930_s16 + $0x90] sm:$0xff] %v2258_v0  ;;  %v1351_v32 = vmul.f32 %v2813_v56, %v1310_v30  ;;  %v1309_v39 = vsub.f32 %v2885_v38, %v1270_v62  ;;  %v1274_v21 = vmul.f32 2.0, %v976_v37  ;;  %v844_v4 = vpop.f32.mrb[22].mxu0 }
 0x152   : > { %2273 = vrcp.f32 %v1387_v5  ;;  %v2021_v63 = vpop.f32.mrb[23].mxu1  ;;  %1455 = vst [vmem:[%s2930_s16 + $0x98] sm:$0xff] %v2260_v40  ;;  %v1386_v31 = vadd.f32 1.0, %v1347_v36  ;;  %v1272_v41 = vmul.f32 2.0, %v844_v4  ;;  %v846_v43 = vpop.f32.mrb[23].mxu0  ;;  %v1199_v38 = vadd.f32 %v2809_v52, %v2877_v29 }
 0x153   : > { %2275 = vrcp.f32 %v1385_v35  ;;  %v1349_v20 = vmul.f32 %v2813_v56, %v1308_v58  ;;  %v1390_v34 = vadd.f32 1.0, %v1351_v32  ;;  %v1350_v42 = vmul.f32 %v2813_v56, %v1309_v39 }
 0x154   : > { %v1313_v44 = vsub.f32 %v1196_v33, %v1274_v21  ;;  %v1273_v45 = vmul.f32 2.0, %v846_v43  ;;  %v2262_v15 = vpop.eup %2261  ;;  %2277 = vrcp.f32 %v1386_v31  ;;  %v1311_v49 = vsub.f32 %v2980_v46, %v1272_v41  ;;  %v981_v7 = vpop.f32.mrb[24].mxu1 }
 0x155   : > { %v1388_v12 = vadd.f32 1.0, %v1349_v20  ;;  %v2264_v53 = vpop.eup %2263  ;;  %1457 = vst [vmem:[%s2930_s16 + $0xa8] sm:$0xff] %v2262_v15  ;;  %2279 = vrcp.f32 %v1390_v34  ;;  %v1389_v54 = vadd.f32 1.0, %v1350_v42  ;;  %v850_v19 = vpop.f32.mrb[24].mxu0  ;;  %v1277_v29 = vmul.f32 2.0, %v981_v7 }
 0x156   : > { %v1354_v28 = vmul.f32 %v2813_v56, %v1313_v44  ;;  %v1312_v55 = vsub.f32 %v2988_v50, %v1273_v45  ;;  %v2024_v57 = vpop.f32.mrb[25].mxu1  ;;  %v2266_v26 = vpop.eup %2265  ;;  %1459 = vst [vmem:[%s2930_s16 + $0xb8] sm:$0xff] %v2264_v53  ;;  %v1352_v52 = vmul.f32 %v2813_v56, %v1311_v49  ;;  %v1275_v46 = vmul.f32 2.0, %v850_v19 }
 0x157   : > { %2281 = vrcp.f32 %v1388_v12  ;;  %v852_v60 = vpop.f32.mrb[25].mxu0  ;;  %v2268_v61 = vpop.eup %2267  ;;  %1458 = vst [vmem:[%s2930_s16 + $0xb0] sm:$0xff] %v2266_v26  ;;  %v1316_v8 = vsub.f32 %v1199_v38, %v1277_v29 }
 0x158   : > { %2283 = vrcp.f32 %v1389_v54  ;;  %v1393_v6 = vadd.f32 1.0, %v1354_v28  ;;  %v1353_v1 = vmul.f32 %v2813_v56, %v1312_v55  ;;  %v1276_v50 = vmul.f32 2.0, %v852_v60  ;;  %1462 = vst [vmem:[%s2930_s16 + $0xd0] sm:$0xff] %v2268_v61 }
 0x159   : > { %v2270_v27 = vpop.eup %2269  ;;  %v1391_v24 = vadd.f32 1.0, %v1352_v52  ;;  %v1314_v9 = vsub.f32 %v2894_v47, %v1275_v46  ;;  %v1357_v11 = vmul.f32 %v2813_v56, %v1316_v8 }
 0x15a   : > { %v2272_v51 = vpop.eup %2271  ;;  %1460 = vst [vmem:[%s2930_s16 + $0xc0] sm:$0xff] %v2270_v27  ;;  %2285 = vrcp.f32 %v1393_v6  ;;  %v1392_v10 = vadd.f32 1.0, %v1353_v1  ;;  %v1315_v18 = vsub.f32 %v2898_v48, %v1276_v50 }
 0x15b   : > { %1461 = vst [vmem:[%s2930_s16 + $0xc8] sm:$0xff] %v2272_v51  ;;  %2287 = vrcp.f32 %v1391_v24  ;;  %v1355_v16 = vmul.f32 %v2813_v56, %v1314_v9  ;;  %v1396_v17 = vadd.f32 1.0, %v1357_v11 }
 0x15c   : > { %v2274_v14 = vpop.eup %2273  ;;  %2289 = vrcp.f32 %v1392_v10  ;;  %v1356_v59 = vmul.f32 %v2813_v56, %v1315_v18 }
 0x15d   : > { %v2276_v47 = vpop.eup %2275  ;;  %1465 = vst [vmem:[%s2930_s16 + $0xe8] sm:$0xff] %v2274_v14  ;;  %v1394_v22 = vadd.f32 1.0, %v1355_v16  ;;  %2291 = vrcp.f32 %v1396_v17 }
 0x15e   : > { %1463 = vst [vmem:[%s2930_s16 + $0xd8] sm:$0xff] %v2276_v47  ;;  %v1395_v48 = vadd.f32 1.0, %v1356_v59  ;;  %v2278_v25 = vpop.eup %2277 }
 0x15f   : > { %v2280_v23 = vpop.eup %2279  ;;  %1464 = vst [vmem:[%s2930_s16 + $0xe0] sm:$0xff] %v2278_v25  ;;  %2293 = vrcp.f32 %v1394_v22 }
 0x160   : > { %1468 = vst [vmem:[%s2930_s16 + $0x100] sm:$0xff] %v2280_v23  ;;  %2295 = vrcp.f32 %v1395_v48 }
 0x161   : > { %v2282_v13 = vpop.eup %2281 }
 0x162   : > { %v2284_v56 = vpop.eup %2283  ;;  %1466 = vst [vmem:[%s2930_s16 + $0xf0] sm:$0xff] %v2282_v13 }
 0x163   : > { %1467 = vst [vmem:[%s2930_s16 + $0xf8] sm:$0xff] %v2284_v56 }
 0x164   : > { %v2286_v3 = vpop.eup %2285 }
 0x165   : > { %v2288_v2 = vpop.eup %2287  ;;  %1471 = vst [vmem:[%s2930_s16 + $0x118] sm:$0xff] %v2286_v3  ;;  %1481 = sbr.rel (!%p2474_p3) target bundleno = 437 (0x1b5), region = 52 }
 0x166   : > { %v2290_v5 = vpop.eup %2289  ;;  %1469 = vst [vmem:[%s2930_s16 + $0x108] sm:$0xff] %v2288_v2 }
 0x167   : > { %1470 = vst [vmem:[%s2930_s16 + $0x110] sm:$0xff] %v2290_v5  ;;  %v2292_v30 = vpop.eup %2291 }
 0x168   : > { %1474 = vst [vmem:[%s2930_s16 + $0x130] sm:$0xff] %v2292_v30 }
 0x169   : > { %v2294_v62 = vpop.eup %2293 }
 0x16a   : > { %v2296_v0 = vpop.eup %2295  ;;  %1472 = vst [vmem:[%s2930_s16 + $0x120] sm:$0xff] %v2294_v62 }
 0x16b   : > { %1473 = vst [vmem:[%s2930_s16 + $0x128] sm:$0xff] %v2296_v0 }
 0x16c   : > { %s3232_s17 = smov (!%p1485_p9, %s1484_s17), 13 }
 0x16d   : > { %s1857_s30 = smul.u32 384, %s3232_s17 }
 0x16f   : > { %p1860_p10 = scmp.eq.s32.totalorder %s1857_s30, 0 }
 0x170   : > { %2297 = sdivrem.u32 (!%p1860_p10), %s3232_s17, 13 }
 0x171   : > { %1496 = sbr.rel (%p1860_p10) target bundleno = 437 (0x1b5), region = 56 }
 0x179   : > { %s3055_s27 = spop.drf %2297 }
 0x17a   : > { %p1861_p11 = scmp.le.s32.totalorder %s3055_s27, 0 }
 0x17b   : > { %s3220_s22 = smov (!%p1861_p11), %s3049_s18  ;;  %s3221_s15 = smov (!%p1861_p11), %s2930_s16 }
 0x17c   : > { %1694 = sbr.rel (%p1861_p11) target bundleno = 408 (0x198), region = 113  ;;  %s3064_s6 = smov (!%p1861_p11), 0  }
 0x17d   : > { %s3066_s8 = smov (!%p1861_p11), 0  }
 0x183 LB: >> { %v1510_v33 = vld [vmem:[%s2379_s15] sm:$0xff]  ;;  %v1512_v35 = vld [vmem:[%s2379_s15 + $0x18] sm:$0xff]  ;;  %v1514_v36 = vld [vmem:[%s2379_s15 + $0x30] sm:$0xff]  ;;  %s1588_s9 = sadd.s32 1, %s2383_s6  ;;  %s1504_s8 = sadd.s32 1, %s2387_s8   ;;  %s2387_s8 = sphi %s3066_s8, %s1504_s8   ;;  %s2383_s6 = sphi %s3064_s6, %s3224_s6   ;;  %s2379_s15 = sphi %s3221_s15, %s3223_s15   ;;  %s2375_s22 = sphi %s3220_s22, %s3222_s22  }
 0x184   : >> { %1511 = vst [vmem:[%s2375_s22] sm:$0xff] %v1510_v33  ;;  %1513 = vst [vmem:[%s2375_s22 + $0x18] sm:$0xff] %v1512_v35  ;;  %v1516_v58 = vld [vmem:[%s2379_s15 + $0x48] sm:$0xff]  ;;  %v1518_v37 = vld [vmem:[%s2379_s15 + $0x60] sm:$0xff]  ;;  %p1589_p12 = scmp.ge.s32.totalorder %s1588_s9, %s3055_s27  ;;  %p1503_p13 = scmp.ge.s32.totalorder %s1504_s8, %s3055_s27 }
 0x185   : >> { %1515 = vst [vmem:[%s2375_s22 + $0x30] sm:$0xff] %v1514_v36  ;;  %v1520_v40 = vld [vmem:[%s2379_s15 + $0x78] sm:$0xff]  ;;  %1517 = vst [vmem:[%s2375_s22 + $0x48] sm:$0xff] %v1516_v58  ;;  %v1522_v32 = vld [vmem:[%s2379_s15 + $0x90] sm:$0xff] }
 0x186   : >> { %1519 = vst [vmem:[%s2375_s22 + $0x60] sm:$0xff] %v1518_v37  ;;  %1521 = vst [vmem:[%s2375_s22 + $0x78] sm:$0xff] %v1520_v40  ;;  %v1524_v39 = vld [vmem:[%s2379_s15 + $0xa8] sm:$0xff]  ;;  %v1526_v21 = vld [vmem:[%s2379_s15 + $0xc0] sm:$0xff]  ;;  %s3234_s9 = smov (%p1589_p12, %s1588_s9), 0 }
 0x187   : >> { %1523 = vst [vmem:[%s2375_s22 + $0x90] sm:$0xff] %v1522_v32  ;;  %1525 = vst [vmem:[%s2375_s22 + $0xa8] sm:$0xff] %v1524_v39  ;;  %v1528_v4 = vld [vmem:[%s2379_s15 + $0xd8] sm:$0xff]  ;;  %v1530_v63 = vld [vmem:[%s2379_s15 + $0xf0] sm:$0xff]  ;;  %s1591_s10 = smul.u32 312, %s3234_s9  ;;  %s3224_s6 = smov %s3234_s9 }
 0x188   : >> { %1527 = vst [vmem:[%s2375_s22 + $0xc0] sm:$0xff] %v1526_v21  ;;  %v1532_v31 = vld [vmem:[%s2379_s15 + $0x108] sm:$0xff]  ;;  %1529 = vst [vmem:[%s2375_s22 + $0xd8] sm:$0xff] %v1528_v4  ;;  %v1534_v20 = vld [vmem:[%s2379_s15 + $0x120] sm:$0xff] }
 0x189   : >> { %1531 = vst [vmem:[%s2375_s22 + $0xf0] sm:$0xff] %v1530_v63  ;;  %1533 = vst [vmem:[%s2375_s22 + $0x108] sm:$0xff] %v1532_v31  ;;  %v1536_v41 = vld [vmem:[%s2379_s15 + $0x8] sm:$0xff]  ;;  %v1538_v43 = vld [vmem:[%s2379_s15 + $0x20] sm:$0xff]  ;;  %s3128_s11 = scalar_lea.vmem %s2930_s16, %s1591_s10 [#allocation4]   ;;  %s3131_s12 = scalar_lea.vmem %s3049_s18, %s1591_s10  }
 0x18a   : >> { %1535 = vst [vmem:[%s2375_s22 + $0x120] sm:$0xff] %v1534_v20  ;;  %1537 = vst [vmem:[%s2375_s22 + $0x8] sm:$0xff] %v1536_v41  ;;  %v1540_v34 = vld [vmem:[%s2379_s15 + $0x38] sm:$0xff]  ;;  %v1542_v42 = vld [vmem:[%s2379_s15 + $0x50] sm:$0xff] }
 0x18b   : >> { %1539 = vst [vmem:[%s2375_s22 + $0x20] sm:$0xff] %v1538_v43  ;;  %v1544_v44 = vld [vmem:[%s2379_s15 + $0x68] sm:$0xff]  ;;  %1541 = vst [vmem:[%s2375_s22 + $0x38] sm:$0xff] %v1540_v34  ;;  %v1546_v45 = vld [vmem:[%s2379_s15 + $0x80] sm:$0xff] }
 0x18c   : >> { %1543 = vst [vmem:[%s2375_s22 + $0x50] sm:$0xff] %v1542_v42  ;;  %1545 = vst [vmem:[%s2375_s22 + $0x68] sm:$0xff] %v1544_v44  ;;  %v1548_v15 = vld [vmem:[%s2379_s15 + $0x98] sm:$0xff]  ;;  %v1550_v38 = vld [vmem:[%s2379_s15 + $0xb0] sm:$0xff] }
 0x18d   : >> { %1547 = vst [vmem:[%s2375_s22 + $0x80] sm:$0xff] %v1546_v45  ;;  %1549 = vst [vmem:[%s2375_s22 + $0x98] sm:$0xff] %v1548_v15  ;;  %v1552_v12 = vld [vmem:[%s2379_s15 + $0xc8] sm:$0xff]  ;;  %v1554_v49 = vld [vmem:[%s2379_s15 + $0xe0] sm:$0xff] }
 0x18e   : >> { %1551 = vst [vmem:[%s2375_s22 + $0xb0] sm:$0xff] %v1550_v38  ;;  %v1556_v7 = vld [vmem:[%s2379_s15 + $0xf8] sm:$0xff]  ;;  %1553 = vst [vmem:[%s2375_s22 + $0xc8] sm:$0xff] %v1552_v12  ;;  %v1558_v53 = vld [vmem:[%s2379_s15 + $0x110] sm:$0xff] }
 0x18f   : >> { %1555 = vst [vmem:[%s2375_s22 + $0xe0] sm:$0xff] %v1554_v49  ;;  %1557 = vst [vmem:[%s2375_s22 + $0xf8] sm:$0xff] %v1556_v7  ;;  %v1560_v54 = vld [vmem:[%s2379_s15 + $0x128] sm:$0xff]  ;;  %v1562_v28 = vld [vmem:[%s2379_s15 + $0x10] sm:$0xff] }
 0x190   : >> { %1559 = vst [vmem:[%s2375_s22 + $0x110] sm:$0xff] %v1558_v53  ;;  %1561 = vst [vmem:[%s2375_s22 + $0x128] sm:$0xff] %v1560_v54  ;;  %v1564_v55 = vld [vmem:[%s2379_s15 + $0x28] sm:$0xff]  ;;  %v1566_v19 = vld [vmem:[%s2379_s15 + $0x40] sm:$0xff] }
 0x191   : >> { %1563 = vst [vmem:[%s2375_s22 + $0x10] sm:$0xff] %v1562_v28  ;;  %v1568_v57 = vld [vmem:[%s2379_s15 + $0x58] sm:$0xff]  ;;  %1565 = vst [vmem:[%s2375_s22 + $0x28] sm:$0xff] %v1564_v55  ;;  %v1570_v26 = vld [vmem:[%s2379_s15 + $0x70] sm:$0xff]  ;;  %1506 = sbr.rel (!%p1503_p13) target bundleno = 387 (0x183), region = 119 }
 0x192   : >> { %1567 = vst [vmem:[%s2375_s22 + $0x40] sm:$0xff] %v1566_v19  ;;  %1569 = vst [vmem:[%s2375_s22 + $0x58] sm:$0xff] %v1568_v57  ;;  %v1572_v52 = vld [vmem:[%s2379_s15 + $0x88] sm:$0xff]  ;;  %v1574_v29 = vld [vmem:[%s2379_s15 + $0xa0] sm:$0xff] }
 0x193   : >> { %1571 = vst [vmem:[%s2375_s22 + $0x70] sm:$0xff] %v1570_v26  ;;  %1573 = vst [vmem:[%s2375_s22 + $0x88] sm:$0xff] %v1572_v52  ;;  %v1576_v46 = vld [vmem:[%s2379_s15 + $0xb8] sm:$0xff]  ;;  %v1578_v60 = vld [vmem:[%s2379_s15 + $0xd0] sm:$0xff] }
 0x194   : >> { %1575 = vst [vmem:[%s2375_s22 + $0xa0] sm:$0xff] %v1574_v29  ;;  %v1580_v61 = vld [vmem:[%s2379_s15 + $0xe8] sm:$0xff]  ;;  %1577 = vst [vmem:[%s2375_s22 + $0xb8] sm:$0xff] %v1576_v46  ;;  %v1582_v6 = vld [vmem:[%s2379_s15 + $0x100] sm:$0xff] }
 0x195   : >> { %1579 = vst [vmem:[%s2375_s22 + $0xd0] sm:$0xff] %v1578_v60  ;;  %1581 = vst [vmem:[%s2375_s22 + $0xe8] sm:$0xff] %v1580_v61  ;;  %v1584_v1 = vld [vmem:[%s2379_s15 + $0x118] sm:$0xff]  ;;  %v1586_v50 = vld [vmem:[%s2379_s15 + $0x130] sm:$0xff]  ;;  %s3223_s15 = smov %s3128_s11 }
 0x196   : >> { %1583 = vst [vmem:[%s2375_s22 + $0x100] sm:$0xff] %v1582_v6  ;;  %1585 = vst [vmem:[%s2375_s22 + $0x118] sm:$0xff] %v1584_v1 }
 0x197   : >> { %1587 = vst [vmem:[%s2375_s22 + $0x130] sm:$0xff] %v1586_v50  ;;  %s3222_s22 = smov %s3131_s12 }
 0x198 PF: > { %2299 = sdivrem.u32 %s3232_s17, 13 }
 0x199   : > { %s1862_s7 = smul.u32 312, %s3055_s27 }
 0x19b   : > { %s3182_s0 = scalar_lea.vmem %s2930_s16, %s1862_s7 [#allocation4]   ;;  %s3185_s13 = scalar_lea.vmem %s3049_s18, %s1862_s7  }
 0x1a1   : > { %s3187_s14 = spop.drf %2299 }
 0x1a2   : > { %p1864_p0 = scmp.le.s32.totalorder %s3187_s14, 0 }
 0x1a3   : > { %s2389_s20 = smov (!%p1864_p0), %s3185_s13   ;;  %s2393_s19 = smov (!%p1864_p0), %s3182_s0  }
 0x1a4   : > { %1708 = sbr.rel (%p1864_p0) target bundleno = 437 (0x1b5), region = 124  ;;  %s2397_s26 = smov (!%p1864_p0), 0  }
 0x1a5   : > { %s2401_s28 = smov (!%p1864_p0), 0  }
 0x1ab LB: >> { %v1611_v27 = vld [vmem:[%s2395_s19] sm:$0xff]  ;;  %v1613_v24 = vld [vmem:[%s2395_s19 + $0x8] sm:$0xff]  ;;  %v1615_v8 = vld [vmem:[%s2395_s19 + $0x10] sm:$0xff]  ;;  %s1617_s16 = sadd.s32 1, %s2399_s26  ;;  %s1605_s28 = sadd.s32 1, %s2403_s28   ;;  %s2403_s28 = sphi %s2401_s28, %s1605_s28   ;;  %s2399_s26 = sphi %s2397_s26, %s2398_s26   ;;  %s2395_s19 = sphi %s2393_s19, %s1622_s19   ;;  %s2391_s20 = sphi %s2389_s20, %s1623_s20  }
 0x1ac   : >> { %1612 = vst [vmem:[%s2391_s20] sm:$0xff] %v1611_v27  ;;  %1614 = vst [vmem:[%s2391_s20 + $0x8] sm:$0xff] %v1613_v24  ;;  %p1618_p1 = scmp.ge.s32.totalorder %s1617_s16, %s3187_s14  ;;  %p1604_p2 = scmp.ge.s32.totalorder %s1605_s28, %s3187_s14 }
 0x1ad   : >> { %1616 = vst [vmem:[%s2391_s20 + $0x10] sm:$0xff] %v1615_v8 }
 0x1ae   : >> { %s3236_s16 = smov (%p1618_p1, %s1617_s16), 0  ;;  %1607 = sbr.rel (!%p1604_p2) target bundleno = 427 (0x1ab), region = 130 }
 0x1af   : >> { %s1620_s17 = smul.u32 24, %s3236_s16  ;;  %s2398_s26 = smov %s3236_s16  }
 0x1b1   : >> { %s1622_s19 = scalar_lea.vmem %s3182_s0, %s1620_s17 [#allocation4]   ;;  %s1623_s20 = scalar_lea.vmem %s3185_s13, %s1620_s17  }
 0x1b5 PF: > { %s16_s24 = sadd.s32 1, %s2371_s24   ;;  %s3225_s20 = smov %s2359_s21 }
 0x1b6   : > { %p13_p3 = scmp.ge.s32.totalorder %s16_s24, 4   ;;  %s3226_s21 = smov %s2483_s29 }
 0x1b7   : > { %s3227_s22 = smov %s2367_s23  ;;  %s3228_s23 = smov %s3230_s25 }
 0x1b8   :  { %15 = sbr.rel (!%p13_p3) target bundleno = 5 (0x5), region = 141 }

</bundles_post_ra>
